<compile_context>
chip_gen: v7x
topology: tpu7x:2x2x1
jax: 0.10.0
libtpu: 0.0.40
codegen_flags: <defaults>
</compile_context>

<pallas_src>
import functools

import jax
import jax.numpy as jnp
from jax.experimental import pallas as pl
from jax.experimental.pallas import tpu as pltpu


def _entropy_loss_kernel(x_ref, y_ref, out_ref, acc_ref, *, batch, block_rows):
    """Grid axis 0 walks batch tiles (reduction / 'arbitrary' axis).

    x_ref, y_ref : (block_rows, C) input tiles in VMEM (caller dtype).
    out_ref      : (1, 1) f32 in SMEM -- final scalar loss.
    acc_ref      : (1, C) f32 VMEM scratch -- column-wise partial sums of y*log(x)
                   (persists across grid steps).
    """
    i = pl.program_id(0)

    @pl.when(i == 0)
    def _init():
        acc_ref[...] = jnp.zeros_like(acc_ref)

    # Per-tile upcast inside the kernel (no wrapper-side convert / extra HBM traffic).
    x = x_ref[...].astype(jnp.float32)
    y = y_ref[...].astype(jnp.float32)
    term = y * jnp.log(x)  # (block_rows, C); EUP log rides free slack (HBM-bound kernel)

    if batch % block_rows != 0:
        # Last tile hangs past the batch: mask out-of-range rows (their data is garbage).
        row = jax.lax.broadcasted_iota(jnp.int32, term.shape, 0) + i * block_rows
        term = jnp.where(row < batch, term, 0.0)

    # Column-wise partial sums only; keeps every grid step on the vector path.
    acc_ref[...] += jnp.sum(term, axis=0, keepdims=True)

    @pl.when(i == pl.num_programs(0) - 1)
    def _finalize():
        # Single cross-lane reduction + (-1/B) scale, done exactly once.
        out_ref[0, 0] = jnp.sum(acc_ref[...]) * jnp.float32(-1.0 / batch)


def _pick_block_rows(batch, num_classes, itemsize_x, itemsize_y,
                     budget_bytes=24 * 1024 * 1024, max_rows=2048):
    """Largest batch tile whose double-buffered x+y tiles fit the VMEM budget."""
    per_row = num_classes * (itemsize_x + itemsize_y)
    rows = budget_bytes // (2 * per_row)  # x2: pipeline double-buffering of both inputs
    rows = min(rows, max_rows)
    if rows >= batch:
        return batch                       # full extent: always a legal block shape
    return max(8, (rows // 8) * 8)         # sublane-aligned partial tile


def entropy_loss(x, y, *, block_rows=None):
    """Pallas equivalent of EntropyLoss.forward(x, y) -> scalar float32."""
    assert x.shape == y.shape and x.ndim == 2
    batch, num_classes = x.shape
    if block_rows is None:
        block_rows = _pick_block_rows(batch, num_classes,
                                      jnp.dtype(x.dtype).itemsize,
                                      jnp.dtype(y.dtype).itemsize)
    num_tiles = pl.cdiv(batch, block_rows)

    kernel = functools.partial(_entropy_loss_kernel,
                               batch=batch, block_rows=block_rows)
    out = pl.pallas_call(
        kernel,
        out_shape=jax.ShapeDtypeStruct((1, 1), jnp.float32),
        grid_spec=pltpu.PrefetchScalarGridSpec(
            num_scalar_prefetch=0,
            grid=(num_tiles,),
            in_specs=[
                pl.BlockSpec((block_rows, num_classes), lambda i: (i, 0)),
                pl.BlockSpec((block_rows, num_classes), lambda i: (i, 0)),
            ],
            out_specs=pl.BlockSpec(memory_space=pltpu.MemorySpace.SMEM),
            scratch_shapes=[pltpu.VMEM((1, num_classes), jnp.float32)],
        ),
        compiler_params=pltpu.CompilerParams(
            dimension_semantics=("arbitrary",),    # accumulator / reduction axis
            vmem_limit_bytes=48 * 1024 * 1024,     # < 64 MiB (v7x), raises v5e/v6e defaults
        ),
    )(x, y)
    return out[0, 0]


if __name__ == "__main__":
    key = jax.random.PRNGKey(0)

    def make_probs(k, b, c, dtype=jnp.float32):
        kx, ky = jax.random.split(k)
        xp = jax.nn.softmax(jax.random.normal(kx, (b, c), dtype=jnp.float32), axis=1)
        yp = jax.nn.softmax(jax.random.normal(ky, (b, c), dtype=jnp.float32), axis=1)
        return xp.astype(dtype), yp.astype(dtype)

    def ref_loss(xp, yp):
        xf = xp.astype(jnp.float32)
        yf = yp.astype(jnp.float32)
        return -jnp.mean(jnp.sum(yf * jnp.log(xf), axis=1))

    k1, k2 = jax.random.split(key)

    # 1) Small (batch, num_classes) shape: single tile, single grid step.
    B, C = 8, 32
    x, y = make_probs(k1, B, C)
    loss = entropy_loss(x, y)
    jax.block_until_ready(loss)
    assert jnp.allclose(loss, ref_loss(x, y), rtol=1e-5, atol=1e-6), (loss, ref_loss(x, y))

    # 2) Multi-tile path with a ragged last tile (exercises pipelining + row mask).
    B2, C2 = 20, 128
    x2, y2 = make_probs(k2, B2, C2)
    loss2 = entropy_loss(x2, y2, block_rows=8)  # grid of 3 tiles, last one partial
    jax.block_until_ready(loss2)
    assert jnp.allclose(loss2, ref_loss(x2, y2), rtol=1e-5, atol=1e-6), (loss2, ref_loss(x2, y2))

    print("KERNEL_OK")
</pallas_src>

<mosaic_0001>
module attributes {stable_mosaic.version = 11 : i64} {
  func.func @_entropy_loss_kernel(%arg0: i32, %arg1: memref<8x32xf32, #tpu.memory_space<vmem>>, %arg2: memref<8x32xf32, #tpu.memory_space<vmem>>, %arg3: memref<1x1xf32, #tpu.memory_space<smem>>, %arg4: memref<1x32xf32, #tpu.memory_space<vmem>>) attributes {dimension_semantics = [#tpu.dimension_semantics<arbitrary>], iteration_bounds = array<i64: 1>, scalar_prefetch = 0 : i64, scratch_operands = 1 : i64, tpu.core_type = #tpu.core_type<tc>, window_params = [{transform_indices = @transform_0, window_bounds = array<i64: 8, 32>}, {transform_indices = @transform_1, window_bounds = array<i64: 8, 32>}, {transform_indices = @transform_2, window_bounds = array<i64: 1, 1>}]} {
    %c0_i32 = arith.constant 0 : i32
    %0 = arith.cmpi eq, %arg0, %c0_i32 : i32
    %1 = arith.extui %0 : i1 to i32
    %c0_i32_0 = arith.constant 0 : i32
    %2 = arith.cmpi ne, %1, %c0_i32_0 : i32
    scf.if %2 {
      %cst_10 = arith.constant 0.000000e+00 : f32
      %15 = vector.broadcast %cst_10 : f32 to vector<1x32xf32>
      %c0_11 = arith.constant 0 : index
      %c0_12 = arith.constant 0 : index
      %16 = vector.load %arg4[%c0_11, %c0_12] : memref<1x32xf32, #tpu.memory_space<vmem>>, vector<1x32xf32>
      tpu.vector_store %arg4[%c0_11, %c0_12], %15 {strides = array<i32>} : memref<1x32xf32, #tpu.memory_space<vmem>>, vector<1x32xf32>,
    } else {
    }
    %c0 = arith.constant 0 : index
    %c0_1 = arith.constant 0 : index
    %3 = vector.load %arg1[%c0, %c0_1] : memref<8x32xf32, #tpu.memory_space<vmem>>, vector<8x32xf32>
    %c0_2 = arith.constant 0 : index
    %c0_3 = arith.constant 0 : index
    %4 = vector.load %arg2[%c0_2, %c0_3] : memref<8x32xf32, #tpu.memory_space<vmem>>, vector<8x32xf32>
    %5 = math.log %3 : vector<8x32xf32>
    %6 = arith.mulf %4, %5 : vector<8x32xf32>
    %c0_4 = arith.constant 0 : index
    %c0_5 = arith.constant 0 : index
    %7 = vector.load %arg4[%c0_4, %c0_5] : memref<1x32xf32, #tpu.memory_space<vmem>>, vector<1x32xf32>
    %cst = arith.constant dense<0.000000e+00> : vector<32xf32>
    %8 = vector.multi_reduction <add>, %6, %cst [0] : vector<8x32xf32> to vector<32xf32>
    %9 = vector.shape_cast %8 : vector<32xf32> to vector<1x32xf32>
    %10 = arith.addf %7, %9 : vector<1x32xf32>
    %c0_6 = arith.constant 0 : index
    %c0_7 = arith.constant 0 : index
    %11 = vector.load %arg4[%c0_6, %c0_7] : memref<1x32xf32, #tpu.memory_space<vmem>>, vector<1x32xf32>
    tpu.vector_store %arg4[%c0_6, %c0_7], %10 {strides = array<i32>} : memref<1x32xf32, #tpu.memory_space<vmem>>, vector<1x32xf32>,
    %c0_i32_8 = arith.constant 0 : i32
    %12 = arith.cmpi eq, %arg0, %c0_i32_8 : i32
    %13 = arith.extui %12 : i1 to i32
    %c0_i32_9 = arith.constant 0 : i32
    %14 = arith.cmpi ne, %13, %c0_i32_9 : i32
    scf.if %14 {
      %c0_10 = arith.constant 0 : index
      %c0_11 = arith.constant 0 : index
      %15 = vector.load %arg4[%c0_10, %c0_11] : memref<1x32xf32, #tpu.memory_space<vmem>>, vector<1x32xf32>
      %16 = vector.shape_cast %15 : vector<1x32xf32> to vector<1x1x32xf32>
      %cst_12 = arith.constant dense<0.000000e+00> : vector<1xf32>
      %17 = vector.multi_reduction <add>, %16, %cst_12 [1, 2] : vector<1x1x32xf32> to vector<1xf32>
      %18 = vector.shape_cast %17 : vector<1xf32> to vector<1x1x1xf32>
      %19 = vector.extract %18[0, 0, 0] : f32 from vector<1x1x1xf32>
      %cst_13 = arith.constant -1.250000e-01 : f32
      %20 = arith.mulf %19, %cst_13 : f32
      %c0_14 = arith.constant 0 : index
      %c0_15 = arith.constant 0 : index
      %21 = memref.load %arg3[%c0_14, %c0_15] : memref<1x1xf32, #tpu.memory_space<smem>>
      memref.store %20, %arg3[%c0_14, %c0_15] : memref<1x1xf32, #tpu.memory_space<smem>>
    } else {
    }
    return
  }
  func.func @transform_0(%arg0: i32) -> (i32, i32) {
    %c0_i32 = arith.constant 0 : i32
    %c0_i32_0 = arith.constant 0 : i32
    return %arg0, %c0_i32 : i32, i32
  }
  func.func @transform_1(%arg0: i32) -> (i32, i32) {
    %c0_i32 = arith.constant 0 : i32
    %c0_i32_0 = arith.constant 0 : i32
    return %arg0, %c0_i32 : i32, i32
  }
  func.func @transform_2(%arg0: i32) -> (i32, i32) {
    %c0_i32 = arith.constant 0 : i32
    %c0_i32_0 = arith.constant 0 : i32
    %c0_i32_1 = arith.constant 0 : i32
    return %c0_i32, %c0_i32_0 : i32, i32
  }
}

</mosaic_0001>

<bundles_post_ra>
// kernel: tpu_custom_call.1
= control target key start
LH: loop header
LB: loop body
LE: loop exit
PB: predicated region body
PF: predicated region fallthrough
CT: control target
= control target key end

     0   :  { %7 = vsyncpa [#allocation4], 0  ;;  %s217_s0 = inlined_call_operand.hbm [shape: f32[8,32], index: 0, kind: input, shape index: {}]   ;;  %s218_s1 = inlined_call_operand.hbm [shape: f32[8,32], index: 1, kind: input, shape index: {}]   ;;  %s219_s2 = inlined_call_operand.hbm [shape: f32[1,1], index: 2, kind: output, shape index: {}]  }
   0x1   :  { %8 = vsyncpa [#allocation7], 0 }
   0x2   :  { %9 = vsyncpa [#allocation5], 0  ;;  %s159_s9 = smov [#allocation3]   ;;  %s160_s11 = smov [#allocation6]  }
   0x3   :  { %s16_s10 = sshll.u32 %s159_s9, 4  ;;  %s26_s12 = sshll.u32 %s160_s11, 4  ;;  %s17_s10 = int_to_ptr.vmem [resolvable:$true] %s16_s10  ;;  %s27_s12 = int_to_ptr.vmem [resolvable:$true] %s26_s12 }
   0x4   :  { %s99_s15 = scalar_lea.hbm %s217_s0, 128 }
   0x5   :  { %p100_p0 = scmp.ne.s32.totalorder %s217_s0, %s99_s15  ;;  %p103_p1 = scmp.lt.u32.totalorder %s99_s15, %s217_s0 }
   0x7   :  { %p105_p2 = pnand %p103_p1, %p100_p0 }
   0x9   :  { %108 = shalt.err (!%p105_p2)
}
   0xa   :  { %s109_s20 = scalar_lea.vmem %s17_s10, 128  ;;  %p114_p4 = scmp.lt.s32.totalorder %s17_s10, %s17_s10 }
   0xb   :  { %p110_p3 = scmp.ne.s32.totalorder %s17_s10, %s109_s20  ;;  %p115_p5 = scmp.lt.s32.totalorder %s109_s20, %s109_s20 }
   0xd   :  { %p116_p6 = por %p115_p5, %p114_p4 }
   0xf   :  { %p117_p7 = pnand %p116_p6, %p110_p3 }
  0x11   :  { %120 = shalt.err (!%p117_p7)
}
  0x12   :  { %19 = dma.hbm_to_vmem [thread:$0]  %s217_s0, 128, %s17_s10, [#allocation4]  }
  0x13   :  { %s121_s25 = scalar_lea.hbm %s218_s1, 128 }
  0x14   :  { %p122_p8 = scmp.ne.s32.totalorder %s218_s1, %s121_s25  ;;  %p125_p9 = scmp.lt.u32.totalorder %s121_s25, %s218_s1 }
  0x16   :  { %p127_p10 = pnand %p125_p9, %p122_p8 }
  0x18   :  { %130 = shalt.err (!%p127_p10)
}
  0x19   :  { %s131_s30 = scalar_lea.vmem %s27_s12, 128  ;;  %p136_p12 = scmp.lt.s32.totalorder %s27_s12, %s27_s12 }
  0x1a   :  { %p132_p11 = scmp.ne.s32.totalorder %s27_s12, %s131_s30  ;;  %p137_p13 = scmp.lt.s32.totalorder %s131_s30, %s131_s30 }
  0x1c   :  { %p138_p0 = por %p137_p13, %p136_p12 }
  0x1e   :  { %p139_p1 = pnand %p138_p0, %p132_p11 }
  0x20   :  { %142 = shalt.err (!%p139_p1)
}
  0x21   :  { %29 = dma.hbm_to_vmem [thread:$0]  %s218_s1, 128, %s27_s12, [#allocation7]  }
  0x22   :  { %153 = dma.done.wait [#allocation4], 128  }
  0x23   :  { %154 = vsyncadd [#allocation4], 4294967168 }
  0x24   :  { %155 = dma.done.wait [#allocation7], 128  }
  0x25   :  { %156 = vsyncadd [#allocation7], 4294967168  ;;  %vm40_vm0 = vcmask 253952   ;;  %v161_v0 = vmov 0.0   ;;  %v42_v1 = vld [vmem:[#allocation3] sm:$0xff]  ;;  %v43_v3 = vld [vmem:[#allocation6] sm:$0xff] }
  0x26   :  { %41 = vst.msk [vmem:[#allocation2] sm:$0x1] %vm40_vm0, %v161_v0  ;;  %97 = vlog2.f32 %v42_v1  ;;  %vm48_vm1 = vcmask 261120   ;;  %s143_s7 = scalar_lea.hbm %s219_s2, 16 }
  0x27   :  { %p144_p2 = scmp.ne.s32.totalorder %s219_s2, %s143_s7  ;;  %p147_p3 = scmp.lt.u32.totalorder %s143_s7, %s219_s2 }
  0x29   :  { %p149_p4 = pnand %p147_p3, %p144_p2 }
  0x2d   :  { %v47_v12 = vld [vmem:[#allocation2] sm:$0x1] }
  0x30   :  { %v98_v2 = vpop.eup %97 }
  0x31   :  { %v45_v4 = vmul.f32 0.6931472, %v98_v2 }
  0x33   :  { %v46_v5 = vmul.f32 %v45_v4, %v43_v3 }
  0x35   :  { %v49_v6 = vsel %vm48_vm1, %v46_v5, 0.0 }
  0x36   :  { %v50_v7 = vrot.slane %v49_v6, 4 }
  0x38   :  { %v51_v8 = vadd.f32 %v50_v7, %v49_v6 }
  0x3a   :  { %v52_v9 = vrot.slane %v51_v8, 2 }
  0x3c   :  { %v53_v10 = vadd.f32 %v52_v9, %v51_v8 }
  0x3e   :  { %v54_v11 = vrot.slane %v53_v10, 1 }
  0x40   :  { %v55_v13 = vadd.f32 %v54_v11, %v53_v10 }
  0x42   :  { %v56_v14 = vadd.f32 %v55_v13, %v47_v12 }
  0x44   :  { %58 = vst.msk [vmem:[#allocation2] sm:$0x1] %vm40_vm0, %v56_v14 }
  0x4b   :  { %v62_v15 = vld [vmem:[#allocation2] sm:$0x1] }
  0x4c   :  { %v63_v16 = vsel %vm40_vm0, %v62_v15, 0.0 }
  0x4d   :  { %64 = vadd.xlane.f32.xlu0 %v63_v16 }
  0xda   :  { %v65_v17 = vpop.xlane.xlu0 %64 }
  0xdb   :  { %v66_v18 = vrot.slane %v65_v17, 4 }
  0xdd   :  { %v67_v19 = vadd.f32 %v66_v18, %v65_v17 }
  0xdf   :  { %v68_v20 = vrot.slane %v67_v19, 2 }
  0xe1   :  { %v69_v21 = vadd.f32 %v68_v20, %v67_v19 }
  0xe3   :  { %v70_v22 = vrot.slane %v69_v21, 1 }
  0xe5   :  { %v71_v23 = vadd.f32 %v70_v22, %v69_v21 }
  0xe7   :  { %91 = vpush %v71_v23 }
 0x118   :  { %s92_s1 = spop %91 }
 0x119   :  { %s73_s4 = smul.f32 -0.125, %s92_s1 }
 0x11b   :  { %75 = sst [smem:[#allocation8]] %s73_s4 }
 0x11c   :  { %152 = shalt.err (!%p149_p4)
}
 0x11d   :  { %s162_s12 = smov [#allocation8]  }
 0x11e   :  { %83 = dma.smem_to_hbm %s162_s12, 16, %s219_s2, [#allocation5]  }
 0x11f   :  { %157 = dma.done.wait [#allocation5], 16  }
 0x120   :  { %158 = vsyncadd [#allocation5], 4294967280 }
 0x121   :  { %87 = sfence }
 0x122   :  { %88 = vsyncpa [#allocation4], 1 }
 0x123   :  { %89 = vsyncpa [#allocation7], 1 }
 0x124   :  { %90 = vsyncpa [#allocation5], 1 }

</bundles_post_ra>
